<compile_context>
chip_gen: v7x
topology: tpu7x:2x2x1
jax: 0.10.0
libtpu: 0.0.40
codegen_flags: <defaults>
</compile_context>

<pallas_src>
import functools

import jax
import jax.numpy as jnp
from jax import lax
from jax.experimental import pallas as pl
from jax.experimental.pallas import tpu as pltpu

KT = 3        # temporal kernel size from kernel_size=(3, 1, 1); H/W taps are 1x1
EPS = 1e-5    # BatchNorm3d default eps

BLOCK_BUDGET = 16 << 20        # bytes of (in + out) blocks per apply-step, pre double-buffering
STATS_BLOCK_BUDGET = 8 << 20   # bytes of the x block per stats-step


def _stats_kernel(wt_ref, x_ref, stats_ref, *, d_out):
    """Per-tile Gram-sum statistics + cross-tile Chan/Welford combine (per batch element).

    wt_ref   : (KT, C) f32 VMEM   transposed conv depth taps (lane-dense over channels)
    x_ref    : (D, T)      VMEM   input tile (depth on sublanes, HW on lanes)
    stats_ref: (2, C)  f32 VMEM   per-n running [mean; M2], revisited across the lane-tile axis
    """
    j = pl.program_id(1)

    x = x_ref[...].astype(jnp.float32)           # (D, T)
    dfull, t_lanes = x.shape
    n_b = d_out * t_lanes                        # elements per tile per channel (static)

    # 9 channel-independent reductions: 3 tap sums + 6 Gram sums of the depth-3 stencil.
    xx = x * x
    x01 = x[:dfull - 1] * x[1:]
    x02 = x[:dfull - 2] * x[2:]
    s0 = jnp.sum(x[0:d_out])
    s1 = jnp.sum(x[1:1 + d_out])
    s2 = jnp.sum(x[2:2 + d_out])
    g00 = jnp.sum(xx[0:d_out])
    g11 = jnp.sum(xx[1:1 + d_out])
    g22 = jnp.sum(xx[2:2 + d_out])
    g01 = jnp.sum(x01[0:d_out])
    g12 = jnp.sum(x01[1:1 + d_out])
    g02 = jnp.sum(x02[0:d_out])

    # Per-channel stats as tiny lane-vectorized combinations (no per-channel conv replay).
    w = wt_ref[...]                              # (KT, C)
    w0 = w[0:1, :]
    w1 = w[1:2, :]
    w2 = w[2:3, :]                               # (1, C) each
    mean_b = (w0 * s0 + w1 * s1 + w2 * s2) * (1.0 / n_b)
    sumsq = (w0 * w0 * g00 + w1 * w1 * g11 + w2 * w2 * g22
             + 2.0 * (w0 * w1 * g01 + w0 * w2 * g02 + w1 * w2 * g12))
    m2_b = sumsq - n_b * mean_b * mean_b         # within-tile M2 (guarded by the Chan combine)

    @pl.when(j == 0)
    def _init():
        stats_ref[...] = jnp.zeros_like(stats_ref)

    # Chan/Welford combine of equal-sized tiles along the lane-tile axis.
    kf = j.astype(jnp.float32)
    rk = 1.0 / (kf + 1.0)                        # 1 / (k+1)
    w_prev = kf * rk                             # k / (k+1)
    mean_run = stats_ref[0:1, :]
    m2_run = stats_ref[1:2, :]
    delta = mean_b - mean_run
    stats_ref[0:1, :] = mean_run + delta * rk
    stats_ref[1:2, :] = m2_run + m2_b + delta * delta * (w_prev * n_b)


def _apply_kernel(p_ref, x_ref, o_ref, *, d_out, c_out):
    """conv(3,1,1) with BN scale folded into the taps, + folded shift, + ReLU.

    p_ref: (C, KT+1) f32 SMEM       [:, :KT] = scale * w, [:, KT] = beta - scale * mean
    x_ref: (NB, D, T)    VMEM
    o_ref: (NB, C, d_out, T) f32 VMEM   lane-dense NCDHW slab
    """
    x = x_ref[...].astype(jnp.float32)
    xs = [x[:, t:t + d_out, :] for t in range(KT)]   # hoisted shifted slabs, reused per channel
    # C is small (12): the unrolled loop keeps each channel's live set to one slab.
    # TODO(synk): switch to lax.fori_loop if out_channels grows beyond ~32 (vreg pressure).
    for c in range(c_out):
        y = p_ref[c, 0] * xs[0]
        for t in range(1, KT):
            y = y + p_ref[c, t] * xs[t]
        y = y + p_ref[c, KT]
        o_ref[:, c, :, :] = jnp.maximum(y, 0.0)


def _pick_lane_tile(hw, target):
    """Largest multiple of 128 that divides hw and is <= target; else the full width."""
    if hw % 128 != 0 or hw <= target:
        return hw
    t = max((target // 128) * 128, 128)
    while hw % t != 0:
        t -= 128
    return t


def _pick_batch_block(n, per_n_bytes, budget):
    """Largest divisor of n whose blocks stay within the VMEM block budget."""
    nb = 1
    for cand in range(1, n + 1):
        if n % cand != 0:
            continue
        if cand * per_n_bytes > budget:
            break
        nb = cand
    return nb


def _vmem_limit(block_bytes):
    """Scoped VMEM request: double-buffered blocks + headroom, capped for v7x (64 MiB phys)."""
    need = 3 * block_bytes + (4 << 20)
    return int(min(max(need, 32 << 20), 48 << 20))


def conv3d_bn_relu(x, conv_w, conv_b, bn_gamma, bn_beta):
    """x: (N, D, H, W).  conv_w: (C, 1, KT, 1, 1).  Returns (N, C, D-KT+1, H, W) f32."""
    del conv_b  # constant per channel before train-mode BN: cancelled exactly by mean subtraction
    N, D, H, W = x.shape
    C = conv_w.shape[0]
    d_out = D - KT + 1
    HW = H * W

    x3 = x.reshape(N, D, HW)                      # free reshape; dtype preserved (cast in-kernel)
    x_item = x3.dtype.itemsize
    w2 = conv_w.reshape(C, KT).astype(jnp.float32)
    wt = w2.T                                     # (KT, C): lane-dense over channels

    # ---- Phase 1: streaming per-(n, channel) batch statistics (reads x only, tiny output).
    t1_target = max(128, ((STATS_BLOCK_BUDGET // max(D * x_item, 1)) // 128) * 128)
    T1 = _pick_lane_tile(HW, t1_target)
    grid1 = (N, HW // T1)
    p1_block_bytes = D * T1 * x_item + KT * C * 4 + 2 * C * 4

    stats = pl.pallas_call(
        functools.partial(_stats_kernel, d_out=d_out),
        out_shape=jax.ShapeDtypeStruct((N, 2, C), jnp.float32),
        grid=grid1,
        in_specs=[pl.BlockSpec((KT, C), lambda n, j: (0, 0)),
                  pl.BlockSpec((None, D, T1), lambda n, j: (n, 0, j))],
        out_specs=pl.BlockSpec((None, 2, C), lambda n, j: (n, 0, 0)),
        compiler_params=pltpu.CompilerParams(
            dimension_semantics=("parallel", "arbitrary"),
            vmem_limit_bytes=_vmem_limit(p1_block_bytes)),
    )(wt, x3)

    # Exact Chan merge of the equal-count per-n partials (wrapper side, tiny).
    count_n = d_out * HW
    count = N * count_n
    mean_n = stats[:, 0, :]                        # (N, C)
    m2_n = stats[:, 1, :]                          # (N, C)
    mean_nb = jnp.mean(mean_n, axis=0)             # per-channel mean of the bias-free conv
    m2 = jnp.sum(m2_n, axis=0) + count_n * jnp.sum((mean_n - mean_nb[None, :]) ** 2, axis=0)
    var = jnp.maximum(m2 / count, 0.0)             # biased variance (training-mode BN)
    scale = bn_gamma.astype(jnp.float32) * lax.rsqrt(var + EPS)
    shift = bn_beta.astype(jnp.float32) - scale * mean_nb
    params = jnp.concatenate([w2 * scale[:, None], shift[:, None]], axis=1)   # (C, KT+1)

    # ---- Phase 2: normalize + ReLU, output written directly in PyTorch NCDHW order.
    T2 = _pick_lane_tile(HW, 4096)
    per_n_bytes = D * T2 * x_item + C * d_out * T2 * 4
    NB = _pick_batch_block(N, per_n_bytes, BLOCK_BUDGET)
    grid2 = (N // NB, HW // T2)

    out = pl.pallas_call(
        functools.partial(_apply_kernel, d_out=d_out, c_out=C),
        out_shape=jax.ShapeDtypeStruct((N, C, d_out, HW), jnp.float32),
        grid=grid2,
        in_specs=[pl.BlockSpec(memory_space=pltpu.MemorySpace.SMEM),
                  pl.BlockSpec((NB, D, T2), lambda i, j: (i, 0, j))],
        out_specs=pl.BlockSpec((NB, C, d_out, T2), lambda i, j: (i, 0, 0, j)),
        compiler_params=pltpu.CompilerParams(
            dimension_semantics=("parallel", "parallel"),
            vmem_limit_bytes=_vmem_limit(NB * per_n_bytes)),
    )(params, x3)

    return out.reshape(N, C, d_out, H, W)          # free reshape, no transpose


def _reference(x, conv_w, conv_b, bn_gamma, bn_beta):
    """Pure-JAX reference matching the PyTorch module (training-mode BN)."""
    N, D, H, W = x.shape
    C = conv_w.shape[0]
    xin = x.astype(jnp.float32)[:, None]           # unsqueeze(1) -> (N, 1, D, H, W)
    y = lax.conv_general_dilated(
        xin, conv_w.astype(jnp.float32), window_strides=(1, 1, 1), padding="VALID",
        dimension_numbers=("NCDHW", "OIDHW", "NCDHW"),
        precision=lax.Precision.HIGHEST)
    y = y + conv_b.reshape(1, C, 1, 1, 1)
    mean = y.mean(axis=(0, 2, 3, 4), keepdims=True)
    var = ((y - mean) ** 2).mean(axis=(0, 2, 3, 4), keepdims=True)  # biased var (training BN)
    y = (y - mean) / jnp.sqrt(var + EPS)
    y = bn_gamma.reshape(1, C, 1, 1, 1) * y + bn_beta.reshape(1, C, 1, 1, 1)
    return jnp.maximum(y, 0.0)  # .squeeze() is a no-op: no singleton dims


if __name__ == "__main__":
    key = jax.random.PRNGKey(0)
    kx, kw, kb, kg, kbe = jax.random.split(key, 5)

    # Small shapes consistent with the module's forward: x is (N, D, H, W), in_channels=1.
    N, D, H, W = 2, 8, 16, 16
    C_OUT = 12

    x = jax.random.normal(kx, (N, D, H, W), jnp.float32)

    conv_w = 0.2 * jax.random.normal(kw, (C_OUT, 1, KT, 1, 1), jnp.float32)
    conv_b = 0.1 * jax.random.normal(kb, (C_OUT,), jnp.float32)
    bn_gamma = 1.0 + 0.1 * jax.random.normal(kg, (C_OUT,), jnp.float32)
    bn_beta = 0.1 * jax.random.normal(kbe, (C_OUT,), jnp.float32)

    out = conv3d_bn_relu(x, conv_w, conv_b, bn_gamma, bn_beta)
    out = jax.block_until_ready(out)

    ref = _reference(x, conv_w, conv_b, bn_gamma, bn_beta)
    assert out.shape == ref.shape == (N, C_OUT, D - 2, H, W), (out.shape, ref.shape)
    err = float(jnp.max(jnp.abs(out - ref)))
    assert jnp.allclose(out, ref, atol=1e-4, rtol=1e-4), err

    print("KERNEL_OK")
</pallas_src>

<mosaic_0001>
module attributes {stable_mosaic.version = 11 : i64} {
  func.func @_stats_kernel(%arg0: i32, %arg1: i32, %arg2: memref<3x12xf32, #tpu.memory_space<vmem>>, %arg3: memref<1x8x256xf32, #tpu.memory_space<vmem>>, %arg4: memref<1x2x12xf32, #tpu.memory_space<vmem>>) attributes {dimension_semantics = [#tpu.dimension_semantics<parallel>, #tpu.dimension_semantics<arbitrary>], iteration_bounds = array<i64: 2, 1>, scalar_prefetch = 0 : i64, scratch_operands = 0 : i64, tpu.core_type = #tpu.core_type<tc>, window_params = [{pipeline_mode = #tpu.pipeline_mode<synchronous>, transform_indices = @transform_0, window_bounds = array<i64: 3, 12>}, {transform_indices = @transform_1, window_bounds = array<i64: 1, 8, 256>}, {transform_indices = @transform_2, window_bounds = array<i64: 1, 2, 12>}]} {
    %c0 = arith.constant 0 : index
    %c0_0 = arith.constant 0 : index
    %c0_1 = arith.constant 0 : index
    %0 = vector.load %arg3[%c0, %c0_0, %c0_1] : memref<1x8x256xf32, #tpu.memory_space<vmem>>, vector<1x8x256xf32>
    %1 = vector.shape_cast %0 : vector<1x8x256xf32> to vector<8x256xf32>
    %2 = arith.mulf %1, %1 : vector<8x256xf32>
    %3 = vector.extract_strided_slice %1 {offsets = [0, 0], sizes = [7, 256], strides = [1, 1]} : vector<8x256xf32> to vector<7x256xf32>
    %4 = vector.extract_strided_slice %1 {offsets = [1, 0], sizes = [7, 256], strides = [1, 1]} : vector<8x256xf32> to vector<7x256xf32>
    %5 = arith.mulf %3, %4 : vector<7x256xf32>
    %6 = vector.extract_strided_slice %1 {offsets = [0, 0], sizes = [6, 256], strides = [1, 1]} : vector<8x256xf32> to vector<6x256xf32>
    %7 = vector.extract_strided_slice %1 {offsets = [2, 0], sizes = [6, 256], strides = [1, 1]} : vector<8x256xf32> to vector<6x256xf32>
    %8 = arith.mulf %6, %7 : vector<6x256xf32>
    %9 = vector.extract_strided_slice %1 {offsets = [0, 0], sizes = [6, 256], strides = [1, 1]} : vector<8x256xf32> to vector<6x256xf32>
    %10 = vector.shape_cast %9 : vector<6x256xf32> to vector<1x6x256xf32>
    %cst = arith.constant dense<0.000000e+00> : vector<1xf32>
    %11 = vector.multi_reduction <add>, %10, %cst [1, 2] : vector<1x6x256xf32> to vector<1xf32>
    %12 = vector.shape_cast %11 : vector<1xf32> to vector<1x1x1xf32>
    %13 = vector.extract %12[0, 0, 0] : f32 from vector<1x1x1xf32>
    %14 = vector.extract_strided_slice %1 {offsets = [1, 0], sizes = [6, 256], strides = [1, 1]} : vector<8x256xf32> to vector<6x256xf32>
    %15 = vector.shape_cast %14 : vector<6x256xf32> to vector<1x6x256xf32>
    %cst_2 = arith.constant dense<0.000000e+00> : vector<1xf32>
    %16 = vector.multi_reduction <add>, %15, %cst_2 [1, 2] : vector<1x6x256xf32> to vector<1xf32>
    %17 = vector.shape_cast %16 : vector<1xf32> to vector<1x1x1xf32>
    %18 = vector.extract %17[0, 0, 0] : f32 from vector<1x1x1xf32>
    %19 = vector.extract_strided_slice %1 {offsets = [2, 0], sizes = [6, 256], strides = [1, 1]} : vector<8x256xf32> to vector<6x256xf32>
    %20 = vector.shape_cast %19 : vector<6x256xf32> to vector<1x6x256xf32>
    %cst_3 = arith.constant dense<0.000000e+00> : vector<1xf32>
    %21 = vector.multi_reduction <add>, %20, %cst_3 [1, 2] : vector<1x6x256xf32> to vector<1xf32>
    %22 = vector.shape_cast %21 : vector<1xf32> to vector<1x1x1xf32>
    %23 = vector.extract %22[0, 0, 0] : f32 from vector<1x1x1xf32>
    %24 = vector.extract_strided_slice %2 {offsets = [0, 0], sizes = [6, 256], strides = [1, 1]} : vector<8x256xf32> to vector<6x256xf32>
    %25 = vector.shape_cast %24 : vector<6x256xf32> to vector<1x6x256xf32>
    %cst_4 = arith.constant dense<0.000000e+00> : vector<1xf32>
    %26 = vector.multi_reduction <add>, %25, %cst_4 [1, 2] : vector<1x6x256xf32> to vector<1xf32>
    %27 = vector.shape_cast %26 : vector<1xf32> to vector<1x1x1xf32>
    %28 = vector.extract %27[0, 0, 0] : f32 from vector<1x1x1xf32>
    %29 = vector.extract_strided_slice %2 {offsets = [1, 0], sizes = [6, 256], strides = [1, 1]} : vector<8x256xf32> to vector<6x256xf32>
    %30 = vector.shape_cast %29 : vector<6x256xf32> to vector<1x6x256xf32>
    %cst_5 = arith.constant dense<0.000000e+00> : vector<1xf32>
    %31 = vector.multi_reduction <add>, %30, %cst_5 [1, 2] : vector<1x6x256xf32> to vector<1xf32>
    %32 = vector.shape_cast %31 : vector<1xf32> to vector<1x1x1xf32>
    %33 = vector.extract %32[0, 0, 0] : f32 from vector<1x1x1xf32>
    %34 = vector.extract_strided_slice %2 {offsets = [2, 0], sizes = [6, 256], strides = [1, 1]} : vector<8x256xf32> to vector<6x256xf32>
    %35 = vector.shape_cast %34 : vector<6x256xf32> to vector<1x6x256xf32>
    %cst_6 = arith.constant dense<0.000000e+00> : vector<1xf32>
    %36 = vector.multi_reduction <add>, %35, %cst_6 [1, 2] : vector<1x6x256xf32> to vector<1xf32>
    %37 = vector.shape_cast %36 : vector<1xf32> to vector<1x1x1xf32>
    %38 = vector.extract %37[0, 0, 0] : f32 from vector<1x1x1xf32>
    %39 = vector.extract_strided_slice %5 {offsets = [0, 0], sizes = [6, 256], strides = [1, 1]} : vector<7x256xf32> to vector<6x256xf32>
    %40 = vector.shape_cast %39 : vector<6x256xf32> to vector<1x6x256xf32>
    %cst_7 = arith.constant dense<0.000000e+00> : vector<1xf32>
    %41 = vector.multi_reduction <add>, %40, %cst_7 [1, 2] : vector<1x6x256xf32> to vector<1xf32>
    %42 = vector.shape_cast %41 : vector<1xf32> to vector<1x1x1xf32>
    %43 = vector.extract %42[0, 0, 0] : f32 from vector<1x1x1xf32>
    %44 = vector.extract_strided_slice %5 {offsets = [1, 0], sizes = [6, 256], strides = [1, 1]} : vector<7x256xf32> to vector<6x256xf32>
    %45 = vector.shape_cast %44 : vector<6x256xf32> to vector<1x6x256xf32>
    %cst_8 = arith.constant dense<0.000000e+00> : vector<1xf32>
    %46 = vector.multi_reduction <add>, %45, %cst_8 [1, 2] : vector<1x6x256xf32> to vector<1xf32>
    %47 = vector.shape_cast %46 : vector<1xf32> to vector<1x1x1xf32>
    %48 = vector.extract %47[0, 0, 0] : f32 from vector<1x1x1xf32>
    %49 = vector.shape_cast %8 : vector<6x256xf32> to vector<1x6x256xf32>
    %cst_9 = arith.constant dense<0.000000e+00> : vector<1xf32>
    %50 = vector.multi_reduction <add>, %49, %cst_9 [1, 2] : vector<1x6x256xf32> to vector<1xf32>
    %51 = vector.shape_cast %50 : vector<1xf32> to vector<1x1x1xf32>
    %52 = vector.extract %51[0, 0, 0] : f32 from vector<1x1x1xf32>
    %c0_10 = arith.constant 0 : index
    %c0_11 = arith.constant 0 : index
    %53 = vector.load %arg2[%c0_10, %c0_11] : memref<3x12xf32, #tpu.memory_space<vmem>>, vector<3x12xf32>
    %54 = vector.extract_strided_slice %53 {offsets = [0, 0], sizes = [1, 12], strides = [1, 1]} : vector<3x12xf32> to vector<1x12xf32>
    %55 = vector.extract_strided_slice %53 {offsets = [1, 0], sizes = [1, 12], strides = [1, 1]} : vector<3x12xf32> to vector<1x12xf32>
    %56 = vector.extract_strided_slice %53 {offsets = [2, 0], sizes = [1, 12], strides = [1, 1]} : vector<3x12xf32> to vector<1x12xf32>
    %57 = vector.broadcast %13 : f32 to vector<1x12xf32>
    %58 = arith.mulf %54, %57 : vector<1x12xf32>
    %59 = vector.broadcast %18 : f32 to vector<1x12xf32>
    %60 = arith.mulf %55, %59 : vector<1x12xf32>
    %61 = arith.addf %58, %60 : vector<1x12xf32>
    %62 = vector.broadcast %23 : f32 to vector<1x12xf32>
    %63 = arith.mulf %56, %62 : vector<1x12xf32>
    %64 = arith.addf %61, %63 : vector<1x12xf32>
    %cst_12 = arith.constant 6.51041686E-4 : f32
    %65 = vector.broadcast %cst_12 : f32 to vector<1x12xf32>
    %66 = arith.mulf %64, %65 : vector<1x12xf32>
    %67 = arith.mulf %54, %54 : vector<1x12xf32>
    %68 = vector.broadcast %28 : f32 to vector<1x12xf32>
    %69 = arith.mulf %67, %68 : vector<1x12xf32>
    %70 = arith.mulf %55, %55 : vector<1x12xf32>
    %71 = vector.broadcast %33 : f32 to vector<1x12xf32>
    %72 = arith.mulf %70, %71 : vector<1x12xf32>
    %73 = arith.addf %69, %72 : vector<1x12xf32>
    %74 = arith.mulf %56, %56 : vector<1x12xf32>
    %75 = vector.broadcast %38 : f32 to vector<1x12xf32>
    %76 = arith.mulf %74, %75 : vector<1x12xf32>
    %77 = arith.addf %73, %76 : vector<1x12xf32>
    %78 = arith.mulf %54, %55 : vector<1x12xf32>
    %79 = vector.broadcast %43 : f32 to vector<1x12xf32>
    %80 = arith.mulf %78, %79 : vector<1x12xf32>
    %81 = arith.mulf %54, %56 : vector<1x12xf32>
    %82 = vector.broadcast %52 : f32 to vector<1x12xf32>
    %83 = arith.mulf %81, %82 : vector<1x12xf32>
    %84 = arith.addf %80, %83 : vector<1x12xf32>
    %85 = arith.mulf %55, %56 : vector<1x12xf32>
    %86 = vector.broadcast %48 : f32 to vector<1x12xf32>
    %87 = arith.mulf %85, %86 : vector<1x12xf32>
    %88 = arith.addf %84, %87 : vector<1x12xf32>
    %cst_13 = arith.constant 2.000000e+00 : f32
    %89 = vector.broadcast %cst_13 : f32 to vector<1x12xf32>
    %90 = arith.mulf %89, %88 : vector<1x12xf32>
    %91 = arith.addf %77, %90 : vector<1x12xf32>
    %cst_14 = arith.constant 1.536000e+03 : f32
    %92 = vector.broadcast %cst_14 : f32 to vector<1x12xf32>
    %93 = arith.mulf %92, %66 : vector<1x12xf32>
    %94 = arith.mulf %93, %66 : vector<1x12xf32>
    %95 = arith.subf %91, %94 : vector<1x12xf32>
    %c0_i32 = arith.constant 0 : i32
    %96 = arith.cmpi eq, %arg1, %c0_i32 : i32
    %97 = arith.extui %96 : i1 to i32
    %c0_i32_15 = arith.constant 0 : i32
    %98 = arith.cmpi ne, %97, %c0_i32_15 : i32
    scf.if %98 {
      %cst_30 = arith.constant 0.000000e+00 : f32
      %123 = vector.broadcast %cst_30 : f32 to vector<2x12xf32>
      %c0_31 = arith.constant 0 : index
      %c0_32 = arith.constant 0 : index
      %c0_33 = arith.constant 0 : index
      %124 = vector.load %arg4[%c0_31, %c0_32, %c0_33] : memref<1x2x12xf32, #tpu.memory_space<vmem>>, vector<1x2x12xf32>
      %125 = vector.shape_cast %124 : vector<1x2x12xf32> to vector<2x12xf32>
      %126 = vector.shape_cast %123 : vector<2x12xf32> to vector<1x2x12xf32>
      tpu.vector_store %arg4[%c0_31, %c0_32, %c0_33], %126 {strides = array<i32>} : memref<1x2x12xf32, #tpu.memory_space<vmem>>, vector<1x2x12xf32>,
    } else {
    }
    %99 = arith.sitofp %arg1 : i32 to f32
    %cst_16 = arith.constant 1.000000e+00 : f32
    %100 = arith.addf %99, %cst_16 : f32
    %cst_17 = arith.constant 1.000000e+00 : f32
    %101 = arith.divf %cst_17, %100 : f32
    %102 = arith.mulf %99, %101 : f32
    %c0_18 = arith.constant 0 : index
    %c0_19 = arith.constant 0 : index
    %c0_20 = arith.constant 0 : index
    %103 = vector.load %arg4[%c0_18, %c0_19, %c0_20] : memref<1x2x12xf32, #tpu.memory_space<vmem>>, vector<1x1x12xf32>
    %104 = vector.shape_cast %103 : vector<1x1x12xf32> to vector<1x12xf32>
    %c0_21 = arith.constant 0 : index
    %c1 = arith.constant 1 : index
    %c0_22 = arith.constant 0 : index
    %105 = vector.load %arg4[%c0_21, %c1, %c0_22] : memref<1x2x12xf32, #tpu.memory_space<vmem>>, vector<1x1x12xf32>
    %106 = vector.shape_cast %105 : vector<1x1x12xf32> to vector<1x12xf32>
    %107 = arith.subf %66, %104 : vector<1x12xf32>
    %108 = vector.broadcast %101 : f32 to vector<1x12xf32>
    %109 = arith.mulf %107, %108 : vector<1x12xf32>
    %110 = arith.addf %104, %109 : vector<1x12xf32>
    %c0_23 = arith.constant 0 : index
    %c0_24 = arith.constant 0 : index
    %c0_25 = arith.constant 0 : index
    %111 = vector.load %arg4[%c0_23, %c0_24, %c0_25] : memref<1x2x12xf32, #tpu.memory_space<vmem>>, vector<1x1x12xf32>
    %112 = vector.shape_cast %111 : vector<1x1x12xf32> to vector<1x12xf32>
    %113 = vector.shape_cast %110 : vector<1x12xf32> to vector<1x1x12xf32>
    tpu.vector_store %arg4[%c0_23, %c0_24, %c0_25], %113 {strides = array<i32>} : memref<1x2x12xf32, #tpu.memory_space<vmem>>, vector<1x1x12xf32>,
    %114 = arith.addf %106, %95 : vector<1x12xf32>
    %115 = arith.mulf %107, %107 : vector<1x12xf32>
    %cst_26 = arith.constant 1.536000e+03 : f32
    %116 = arith.mulf %102, %cst_26 : f32
    %117 = vector.broadcast %116 : f32 to vector<1x12xf32>
    %118 = arith.mulf %115, %117 : vector<1x12xf32>
    %119 = arith.addf %114, %118 : vector<1x12xf32>
    %c0_27 = arith.constant 0 : index
    %c1_28 = arith.constant 1 : index
    %c0_29 = arith.constant 0 : index
    %120 = vector.load %arg4[%c0_27, %c1_28, %c0_29] : memref<1x2x12xf32, #tpu.memory_space<vmem>>, vector<1x1x12xf32>
    %121 = vector.shape_cast %120 : vector<1x1x12xf32> to vector<1x12xf32>
    %122 = vector.shape_cast %119 : vector<1x12xf32> to vector<1x1x12xf32>
    tpu.vector_store %arg4[%c0_27, %c1_28, %c0_29], %122 {strides = array<i32>} : memref<1x2x12xf32, #tpu.memory_space<vmem>>, vector<1x1x12xf32>,
    return
  }
  func.func @transform_0(%arg0: i32, %arg1: i32) -> (i32, i32) {
    %c0_i32 = arith.constant 0 : i32
    %c0_i32_0 = arith.constant 0 : i32
    %c0_i32_1 = arith.constant 0 : i32
    return %c0_i32, %c0_i32_0 : i32, i32
  }
  func.func @transform_1(%arg0: i32, %arg1: i32) -> (i32, i32, i32) {
    %c0_i32 = arith.constant 0 : i32
    %c0_i32_0 = arith.constant 0 : i32
    return %arg0, %c0_i32, %arg1 : i32, i32, i32
  }
  func.func @transform_2(%arg0: i32, %arg1: i32) -> (i32, i32, i32) {
    %c0_i32 = arith.constant 0 : i32
    %c0_i32_0 = arith.constant 0 : i32
    %c0_i32_1 = arith.constant 0 : i32
    return %arg0, %c0_i32, %c0_i32_0 : i32, i32, i32
  }
}

</mosaic_0001>

<bundles_post_ra>
// kernel: tpu_custom_call.1
= control target key start
LH: loop header
LB: loop body
LE: loop exit
PB: predicated region body
PF: predicated region fallthrough
CT: control target
= control target key end

     0   :  { %7 = vsyncpa [#allocation3], 0  ;;  %s1040_s0 = inlined_call_operand.hbm [shape: f32[3,12], index: 0, kind: input, shape index: {}]   ;;  %s1041_s1 = inlined_call_operand.hbm [shape: f32[2,8,256], index: 1, kind: input, shape index: {}]   ;;  %s1042_s2 = inlined_call_operand.hbm [shape: f32[2,2,12], index: 2, kind: output, shape index: {}]  }
   0x1   :  { %8 = vsyncpa [#allocation6], 0 }
   0x2   :  { %10 = vsyncpa [#allocation6 + $0x1], 0 }
   0x3   :  { %11 = vsyncpa [#allocation4], 0 }
   0x4   :  { %13 = vsyncpa [#allocation4 + $0x1], 0  ;;  %s795_s9 = smov 0   ;;  %s797_s10 = smov 0  }
   0x5   :  { %s799_s11 = smov 0   ;;  %s801_s12 = smov 0  }
   0x6   :  { %s803_s13 = smov 0   ;;  %s805_s14 = smov 0  }
   0x7 LB: > { %s521_s15 = sadd.s32 4294967295, %s774_s14   ;;  %s522_s16 = sadd.s32 4294967294, %s774_s14   ;;  %s774_s14 = sphi %s805_s14, %s19_s14   ;;  %s770_s13 = sphi %s803_s13, %s1067_s13   ;;  %s766_s12 = sphi %s801_s12, %s1066_s12   ;;  %s762_s11 = sphi %s799_s11, %s1065_s11   ;;  %s758_s10 = sphi %s797_s10, %s1064_s10   ;;  %s754_s9 = sphi %s795_s9, %s1063_s9  }
   0x8   : > { %p74_p0 = scmp.ne.s32.totalorder %s758_s10, %s754_s9  ;;  %p829_p1 = scmp.eq.s32.totalorder %s521_s15, 0 }
   0x9   : > { %p833_p2 = scmp.eq.s32.totalorder %s521_s15, 1  ;;  %p104_p3 = scmp.eq.s32.totalorder %s522_s16, 1 }
   0xa   : > { %s1047_s17 = scalar_select %p829_p1, 1, 0 }
   0xb   : > { %s1048_s18 = scalar_select %p833_p2, 1, 0 }
   0xc   : > { %p839_p4 = por %p829_p1, %p74_p0  ;;  %p523_p5 = scmp.ge.s32.totalorder %s774_s14, 1 }
   0xd   : > { %p844_p6 = por %p104_p3, %p74_p0  ;;  %p111_p7 = scmp.lt.s32.totalorder %s774_s14, 3 }
   0xe   : > { %s1049_s19 = scalar_select %p839_p4, 1, 0 }
   0xf   : > { %s1050_s20 = scalar_select %p844_p6, 1, 0 }
  0x10   : > { %p849_p8 = pnand %p523_p5, %p111_p7  ;;  %s776_s22 = smov [#allocation2]  }
  0x11   : > { %s124_s23 = sshll.u32 %s776_s22, 4  ;;  %s31_s25 = sadd.s32 1, %s770_s13  ;;  %s125_s23 = int_to_ptr.vmem [resolvable:$true] %s124_s23 }
  0x12   : > { %s1051_s21 = scalar_select %p849_p8, 1, 0 }
  0x13   : > { %p564_p10 = pneg %p849_p8  ;;  %s61_s26 = sadd.s32 1, %s762_s11 }
  0x14   : > { %p864_p12 = scmp.ge.s32.totalorder %s31_s25, 2  ;;  %s630_s30 = scalar_lea.hbm %s1040_s0, 64 }
  0x15   : > { %p858_p11 = pnand %p564_p10, %p829_p1  ;;  %p631_p13 = scmp.ne.s32.totalorder %s1040_s0, %s630_s30 }
  0x16   : > { %s1053_s27 = scalar_select %p864_p12, 1, 0 }
  0x17   : > { %p632_p0 = pneg %p858_p11  ;;  %p637_p7 = scmp.lt.u32.totalorder %s630_s30, %s1040_s0 }
  0x19   : > { %p633_p3 = pnand %p632_p0, %p631_p13 }
  0x1b   : > { %p634_p5 = pneg %p633_p3 }
  0x1d   : > { %p639_p10 = pnand %p637_p7, %p634_p5 }
  0x1f   : > { %642 = shalt.err (!%p639_p10)
}
  0x20   : > { %s643_s7 = scalar_lea.vmem %s125_s23, 64  ;;  %p651_p1 = scmp.lt.s32.totalorder %s125_s23, %s125_s23 }
  0x21   : > { %p644_p9 = scmp.ne.s32.totalorder %s125_s23, %s643_s7  ;;  %p652_p8 = scmp.lt.s32.totalorder %s643_s7, %s643_s7 }
  0x23   : > { %p646_p6 = pnand %p644_p9, %p632_p0  ;;  %p653_p2 = por %p652_p8, %p651_p1 }
  0x25   : > { %p647_p4 = pneg %p646_p6 }
  0x27   : > { %p654_p12 = pnand %p653_p2, %p647_p4 }
  0x29   : > { %657 = shalt.err (!%p654_p12)
}
  0x2a   : > { %567 = dma.hbm_to_vmem [thread:$0]  (!%p858_p11), %s1040_s0, 64, %s125_s23, [#allocation3]  }
  0x2b   : > { %p1054_p1 = scmp.ne.s32.totalorder %s1053_s27, 0  ;;  %p68_p2 = scmp.ne.s32.totalorder %s762_s11, %s758_s10 }
  0x2c   : > { %p69_p4 = scmp.eq.s32.totalorder %s774_s14, 0  ;;  %p577_p6 = scmp.lt.s32.totalorder %s774_s14, 2 }
  0x2d   : > { %s1069_s25 = smov (%p1054_p1, %s31_s25), 0  ;;  %p1055_p12 = scmp.ne.s32.totalorder %s1048_s18, 0 }
  0x2e   : > { %s56_s16 = ssub.s32 %s770_s13, %s1069_s25  ;;  %p70_p9 = por %p69_p4, %p68_p2 }
  0x2f   : > { %p59_p8 = scmp.eq.s32.totalorder %s56_s16, 0  ;;  %p896_p13 = por %p1055_p12, %p68_p2 }
  0x30   : > { %s135_s24 = sand.u32 1, %s762_s11   ;;  %s537_s27 = sshll.u32 %s770_s13, 8 }
  0x31   : > { %s904_s28 = scalar_select %p59_p8, %s762_s11, %s61_s26  }
  0x32   : > { %s526_s23 = sshll.u32 %s135_s24, 4  ;;  %s910_s3 = scalar_lea.hbm %s1041_s1, %s537_s27 }
  0x33   : > { %s139_s18 = scalar_lea.vmem [#allocation5], %s526_s23  ;;  %p914_p11 = pnand %p577_p6, %p70_p9 }
  0x34   : > { %s149_s4 = sshll.u32 %s139_s18, 4  ;;  %s136_s26 = scalar_lea.sflag [#allocation6], %s135_s24  ;;  %s912_s4 = int_to_ptr.vmem [resolvable:$true] %s149_s4 }
  0x35   : > { %s658_s6 = scalar_lea.hbm %s910_s3, 256  ;;  %p660_p3 = pneg %p914_p11 }
  0x36   : > { %p659_p0 = scmp.ne.s32.totalorder %s910_s3, %s658_s6  ;;  %s663_s15 = scalar_lea.hbm %s1041_s1, 512 }
  0x37   : > { %p664_p10 = scmp.lt.u32.totalorder %s910_s3, %s1041_s1  ;;  %p665_p1 = scmp.lt.u32.totalorder %s663_s15, %s658_s6 }
  0x38   : > { %p661_p5 = pnand %p660_p3, %p659_p0  ;;  %p667_p4 = scmp.lt.u32.totalorder %s658_s6, %s910_s3 }
  0x39   : > { %p666_p2 = por %p665_p1, %p664_p10 }
  0x3a   : > { %p662_p7 = pneg %p661_p5 }
  0x3b   : > { %p668_p6 = por %p667_p4, %p666_p2 }
  0x3d   : > { %p669_p8 = pnand %p668_p6, %p662_p7 }
  0x3f   : > { %672 = shalt.err (!%p669_p8)
}
  0x40   : > { %s673_s24 = scalar_lea.vmem %s912_s4, 256  ;;  %s777_s27 = smov [#allocation5]  }
  0x41   : > { %p674_p9 = scmp.ne.s32.totalorder %s912_s4, %s673_s24  ;;  %s678_s29 = sshll.u32 %s777_s27, 4  ;;  %s679_s29 = int_to_ptr.vmem [resolvable:$false] %s678_s29 }
  0x42   : > { %s680_s30 = scalar_lea.vmem %s679_s29, 512  ;;  %p681_p5 = scmp.lt.s32.totalorder %s912_s4, %s679_s29 }
  0x43   : > { %p676_p12 = pnand %p674_p9, %p660_p3  ;;  %p682_p10 = scmp.lt.s32.totalorder %s680_s30, %s673_s24 }
  0x45   : > { %p677_p0 = pneg %p676_p12  ;;  %p683_p1 = por %p682_p10, %p681_p5 }
  0x47   : > { %p684_p2 = pnand %p683_p1, %p677_p0 }
  0x49   : > { %687 = shalt.err (!%p684_p2)
}
  0x4a   : > { %571 = dma.hbm_to_vmem [thread:$0]  (!%p914_p11), %s910_s3, 256, %s912_s4, %s136_s26  }
  0x4b   : > { %p1058_p7 = scmp.ne.s32.totalorder %s1051_s21, 0 }
  0x4c   : > { %p1059_p3 = scmp.ne.s32.totalorder (!%p1058_p7), %s1047_s17, 0 }
  0x4d   : > { %158 = sbr.rel (%p1058_p7) target bundleno = 345 (0x159), region = 28 }
  0x54   : > { %741 = dma.done.wait (%p1059_p3), [#allocation3], 64  }
  0x55   : > { %743 = vsyncadd (%p1059_p3), [#allocation3], 4294967232  ;;  %s950_s18 = sand.u32 1, %s758_s10   ;;  %p1060_p4 = scmp.ne.s32.totalorder %s1049_s19, 0 }
  0x56   : > { %s531_s6 = sshll.u32 %s950_s18, 4  ;;  %s165_s5 = scalar_lea.sflag [#allocation6], %s950_s18 }
  0x57   : > { %s168_s7 = scalar_lea.vmem [#allocation5], %s531_s6 }
  0x58   : > { %745 = dma.done.wait (%p1060_p4), %s165_s5, 256  }
  0x59   : > { %747 = vsyncadd (%p1060_p4), %s165_s5, 4294967040  ;;  %s532_s21 = sshll.u32 %s950_s18, 1  ;;  %vm391_vm0 = vcmask 91136   ;;  %v778_v0 = vmov 0.0   ;;  %vm208_vm1 = vcmask 1045504   ;;  %v190_v1 = vld [vmem:[%s168_s7] sm:$0xff] }
  0x5a   : > { %s959_s3 = scalar_lea.vmem [#allocation7], %s532_s21  ;;  %v191_v2 = vld [vmem:[%s168_s7 + $0x8] sm:$0xff]  ;;  %v209_v3 = vsel %vm208_vm1, %v190_v1, 0.0  ;;  %v202_v5 = vrot.slane %v190_v1, 2  ;;  %v196_v8 = vrot.slane %v190_v1, 1  ;;  %v192_v10 = vmul.f32 %v190_v1, %v190_v1  ;;  %s534_s27 = sshll.u32 %s766_s12, 5 }
  0x5b   : > { %392 = vst.msk [vmem:[%s959_s3] sm:$0x3] %vm391_vm0, %v778_v0  ;;  %v210_v4 = vsel %vm208_vm1, %v191_v2, 0.0  ;;  %v203_v6 = vrot.slane %v191_v2, 2  ;;  %v197_v9 = vrot.slane %v191_v2, 1  ;;  %v193_v13 = vmul.f32 %v191_v2, %v191_v2  ;;  %s428_s29 = sshll.u32 %s959_s3, 4  ;;  %s989_s5 = scalar_lea.hbm %s1042_s2, %s534_s27  ;;  %s991_s29 = int_to_ptr.vmem [resolvable:$true] %s428_s29 }
  0x5c   : > { %v211_v7 = vadd.f32 %v210_v4, %v209_v3  ;;  %v233_v11 = vsel %vm208_vm1, %v202_v5, 0.0  ;;  %v221_v15 = vsel %vm208_vm1, %v196_v8, 0.0  ;;  %v245_v17 = vsel %vm208_vm1, %v192_v10, 0.0  ;;  %s415_s7 = scalar_lea.sflag [#allocation4], %s950_s18  ;;  %s688_s21 = scalar_lea.vmem %s991_s29, 32 }
  0x5d   : > { %v234_v12 = vsel %vm208_vm1, %v203_v6, 0.0  ;;  %v222_v16 = vsel %vm208_vm1, %v197_v9, 0.0  ;;  %v246_v19 = vsel %vm208_vm1, %v193_v13, 0.0  ;;  %v259_v20 = vrot.slane %v192_v10, 1  ;;  %p689_p11 = scmp.ne.s32.totalorder %s991_s29, %s688_s21  ;;  %s779_s12 = smov [#allocation7]  }
  0x5e   : > { %212 = vadd.xlane.f32.xlu0 %v211_v7  ;;  %v235_v14 = vadd.f32 %v234_v12, %v233_v11  ;;  %v223_v18 = vadd.f32 %v222_v16, %v221_v15  ;;  %v260_v21 = vrot.slane %v193_v13, 1  ;;  %v247_v22 = vadd.f32 %v246_v19, %v245_v17 }
  0x5f   : > { %v275_v23 = vrot.slane %v192_v10, 2  ;;  %v276_v24 = vrot.slane %v193_v13, 2  ;;  %v200_v25 = vmul.f32 %v196_v8, %v190_v1  ;;  %v263_v26 = vsel %vm208_vm1, %v259_v20, 0.0  ;;  %p690_p6 = pnand %p689_p11, %p896_p13 }
  0x60   : > { %236 = vadd.xlane.f32.xlu1 %v235_v14  ;;  %v264_v27 = vsel %vm208_vm1, %v260_v21, 0.0  ;;  %v201_v28 = vmul.f32 %v197_v9, %v191_v2  ;;  %v206_v29 = vmul.f32 %v202_v5, %v190_v1  ;;  %v207_v33 = vmul.f32 %v203_v6, %v191_v2 }
  0x61   : > { %v265_v30 = vadd.f32 %v264_v27, %v263_v26  ;;  %v279_v31 = vsel %vm208_vm1, %v275_v23, 0.0  ;;  %v280_v32 = vsel %vm208_vm1, %v276_v24, 0.0  ;;  %v291_v34 = vsel %vm208_vm1, %v200_v25, 0.0  ;;  %p691_p8 = pneg %p690_p6 }
  0x62   : > { %224 = vadd.xlane.f32.xlu0 %v223_v18  ;;  %v292_v35 = vsel %vm208_vm1, %v201_v28, 0.0  ;;  %v305_v36 = vrot.slane %v200_v25, 1  ;;  %v306_v37 = vrot.slane %v201_v28, 1  ;;  %v281_v38 = vadd.f32 %v280_v32, %v279_v31 }
  0x63   : > { %v293_v41 = vadd.f32 %v292_v35, %v291_v34  ;;  %v321_v42 = vsel %vm208_vm1, %v206_v29, 0.0  ;;  %v322_v43 = vsel %vm208_vm1, %v207_v33, 0.0  ;;  %vm405_vm2 = vcmask 90112  }
  0x64   : > { %248 = vadd.xlane.f32.xlu1 %v247_v22  ;;  %v309_v39 = vsel %vm208_vm1, %v305_v36, 0.0  ;;  %v310_v40 = vsel %vm208_vm1, %v306_v37, 0.0  ;;  %v323_v45 = vadd.f32 %v322_v43, %v321_v42 }
  0x65   : > { %v311_v44 = vadd.f32 %v310_v40, %v309_v39 }
  0x66   : > { %266 = vadd.xlane.f32.xlu0 %v265_v30 }
  0x68   : > { %282 = vadd.xlane.f32.xlu1 %v281_v38 }
  0x6a   : > { %294 = vadd.xlane.f32.xlu0 %v293_v41 }
  0x6c   : > { %312 = vadd.xlane.f32.xlu1 %v311_v44 }
  0x6e   : > { %324 = vadd.xlane.f32.xlu0 %v323_v45  ;;  %v333_v45 = vld [vmem:[#allocation2] sm:$0x7] }
  0xeb   : > { %v213_v46 = vpop.xlane.xlu0 %212 }
  0xec   : > { %v214_v47 = vrot.slane %v213_v46, 4 }
  0xed   : > { %v237_v48 = vpop.xlane.xlu1 %236 }
  0xee   : > { %v215_v49 = vadd.f32 %v214_v47, %v213_v46  ;;  %v238_v50 = vrot.slane %v237_v48, 4 }
  0xef   : > { %v225_v51 = vpop.xlane.xlu0 %224 }
  0xf0   : > { %v216_v52 = vrot.slane %v215_v49, 2  ;;  %v239_v53 = vadd.f32 %v238_v50, %v237_v48  ;;  %v226_v54 = vrot.slane %v225_v51, 4 }
  0xf1   : > { %v249_v55 = vpop.xlane.xlu1 %248 }
  0xf2   : > { %v240_v56 = vrot.slane %v239_v53, 2  ;;  %v227_v57 = vadd.f32 %v226_v54, %v225_v51  ;;  %v250_v58 = vrot.slane %v249_v55, 4  ;;  %v217_v59 = vadd.f32 %v216_v52, %v215_v49 }
  0xf3   : > { %v267_v60 = vpop.xlane.xlu0 %266 }
  0xf4   : > { %v228_v61 = vrot.slane %v227_v57, 2  ;;  %v251_v62 = vadd.f32 %v250_v58, %v249_v55  ;;  %v268_v63 = vrot.slane %v267_v60, 4  ;;  %v218_v0 = vrot.slane %v217_v59, 1 }
  0xf5   : > { %v283_v1 = vpop.xlane.xlu1 %282  ;;  %v241_v2 = vadd.f32 %v240_v56, %v239_v53  ;;  %v349_v53 = vmul.f32 %v333_v45, %v333_v45  ;;  %v365_v55 = vrot.slane %v333_v45, 1  ;;  %v370_v56 = vrot.slane %v333_v45, 2 }
  0xf6   : > { %v252_v3 = vrot.slane %v251_v62, 2  ;;  %v269_v4 = vadd.f32 %v268_v63, %v267_v60  ;;  %v284_v5 = vrot.slane %v283_v1, 4  ;;  %v219_v6 = vadd.f32 %v218_v0, %v217_v59 }
  0xf7   : > { %v295_v7 = vpop.xlane.xlu0 %294  ;;  %v229_v8 = vadd.f32 %v228_v61, %v227_v57  ;;  %v242_v9 = vrot.slane %v241_v2, 1  ;;  %v367_v63 = vmul.f32 %v365_v55, %v333_v45  ;;  %v372_v0 = vmul.f32 %v370_v56, %v333_v45 }
  0xf8   : > { %v270_v10 = vrot.slane %v269_v4, 2  ;;  %v285_v11 = vadd.f32 %v284_v5, %v283_v1  ;;  %v296_v12 = vrot.slane %v295_v7, 4  ;;  %538 = vpush %v219_v6  ;;  %v253_v13 = vadd.f32 %v252_v3, %v251_v62  ;;  %v399_v62 = vld [vmem:[%s959_s3] sm:$0x1] }
  0xf9   : > { %v313_v14 = vpop.xlane.xlu1 %312  ;;  %v230_v15 = vrot.slane %v229_v8, 1  ;;  %v243_v22 = vadd.f32 %v242_v9, %v241_v2 }
  0xfa   : > { %v286_v16 = vrot.slane %v285_v11, 2  ;;  %v297_v17 = vadd.f32 %v296_v12, %v295_v7  ;;  %v314_v18 = vrot.slane %v313_v14, 4  ;;  %v254_v19 = vrot.slane %v253_v13, 1 }
  0xfb   : > { %v325_v20 = vpop.xlane.xlu0 %324  ;;  %v231_v21 = vadd.f32 %v230_v15, %v229_v8  ;;  %v271_v23 = vadd.f32 %v270_v10, %v269_v4 }
  0xfc   : > { %v298_v24 = vrot.slane %v297_v17, 2  ;;  %v315_v25 = vadd.f32 %v314_v18, %v313_v14  ;;  %v326_v26 = vrot.slane %v325_v20, 4  ;;  %v255_v27 = vadd.f32 %v254_v19, %v253_v13 }
  0xfd   : > { %540 = vpush %v231_v21  ;;  %v272_v28 = vrot.slane %v271_v23, 1  ;;  %v287_v29 = vadd.f32 %v286_v16, %v285_v11 }
  0xfe   : > { %v316_v30 = vrot.slane %v315_v25, 2  ;;  %v327_v31 = vadd.f32 %v326_v26, %v325_v20  ;;  %542 = vpush %v243_v22  ;;  %v299_v32 = vadd.f32 %v298_v24, %v297_v17 }
  0xff   : > { %544 = vpush %v255_v27  ;;  %v273_v33 = vadd.f32 %v272_v28, %v271_v23  ;;  %v288_v34 = vrot.slane %v287_v29, 1 }
 0x100   : > { %v317_v35 = vadd.f32 %v316_v30, %v315_v25  ;;  %v328_v36 = vrot.slane %v327_v31, 2  ;;  %v300_v37 = vrot.slane %v299_v32, 1  ;;  %v400_v25 = vld [vmem:[%s959_s3 + $0x1] sm:$0x1] }
 0x101   : > { %546 = vpush %v273_v33  ;;  %v289_v38 = vadd.f32 %v288_v34, %v287_v29 }
 0x102   : > { %v329_v39 = vadd.f32 %v328_v36, %v327_v31  ;;  %v301_v40 = vadd.f32 %v300_v37, %v299_v32  ;;  %v318_v41 = vrot.slane %v317_v35, 1 }
 0x103   : > { %548 = vpush %v289_v38 }
 0x104   : > { %550 = vpush %v301_v40  ;;  %v319_v42 = vadd.f32 %v318_v41, %v317_v35  ;;  %v330_v43 = vrot.slane %v329_v39, 1 }
 0x106   : > { %552 = vpush %v319_v42  ;;  %v331_v44 = vadd.f32 %v330_v43, %v329_v39 }
 0x108   : > { %554 = vpush %v331_v44 }
 0x129   : > { %s539_s17 = spop %538 }
 0x12a   : > { %v334_v46 = vstv %s539_s17  ;;  %s692_s17 = sshll.u32 %s779_s12, 4  ;;  %s693_s17 = int_to_ptr.vmem [resolvable:$false] %s692_s17 }
 0x12b   : > { %v335_v51 = vmul.f32 %v334_v46, %v333_v45  ;;  %p695_p9 = scmp.lt.s32.totalorder %s991_s29, %s693_s17 }
 0x12e   : > { %s541_s19 = spop %540 }
 0x12f   : > { %v336_v47 = vstv %s541_s19  ;;  %s543_s4 = spop %542  ;;  %s694_s19 = scalar_lea.vmem %s693_s17, 64 }
 0x130   : > { %v337_v48 = vmul.f32 %v336_v47, %v333_v45  ;;  %v342_v49 = vstv %s543_s4  ;;  %s545_s26 = spop %544  ;;  %p696_p12 = scmp.lt.s32.totalorder %s694_s19, %s688_s21 }
 0x131   : > { %v343_v50 = vmul.f32 %v342_v49, %v333_v45  ;;  %v350_v2 = vstv %s545_s26 }
 0x132   : > { %v339_v52 = vrot.slane %v337_v48, 1  ;;  %s547_s8 = spop %546  ;;  %v351_v10 = vmul.f32 %v350_v2, %v349_v53  ;;  %p697_p0 = por %p696_p12, %p695_p9 }
 0x133   : > { %v352_v54 = vstv %s547_s8  ;;  %v345_v58 = vrot.slane %v343_v50, 2 }
 0x134   : > { %v341_v57 = vadd.f32 %v339_v52, %v335_v51  ;;  %s549_s15 = spop %548  ;;  %v353_v59 = vmul.f32 %v352_v54, %v349_v53  ;;  %p698_p5 = pnand %p697_p0, %p691_p8 }
 0x135   : > { %s551_s16 = spop %550  ;;  %v358_v61 = vstv %s549_s15 }
 0x136   : > { %v347_v60 = vadd.f32 %v345_v58, %v341_v57  ;;  %v368_v3 = vstv %s551_s16  ;;  %v355_v5 = vrot.slane %v353_v59, 1  ;;  %v359_v6 = vmul.f32 %v358_v61, %v349_v53 }
 0x137   : > { %s553_s23 = spop %552  ;;  %v369_v11 = vmul.f32 %v368_v3, %v367_v63 }
 0x138   : > { %v348_v1 = vmul.f32 0.0006510417, %v347_v60  ;;  %v376_v4 = vstv %s553_s23  ;;  %v357_v14 = vadd.f32 %v355_v5, %v351_v10  ;;  %v361_v15 = vrot.slane %v359_v6, 2 }
 0x139   : > { %v377_v7 = vmul.f32 %v376_v4, %v367_v63  ;;  %s555_s24 = spop %554 }
 0x13a   : > { %v401_v8 = vsub.f32 %v348_v1, %v399_v62  ;;  %v373_v9 = vstv %s555_s24  ;;  %v384_v18 = vmul.f32 1536.0, %v348_v1  ;;  %v363_v20 = vadd.f32 %v361_v15, %v357_v14 }
 0x13b   : > { %v374_v12 = vmul.f32 %v373_v9, %v372_v0  ;;  %v379_v16 = vrot.slane %v377_v7, 1 }
 0x13c   : > { %v404_v13 = vadd.f32 %v401_v8, %v399_v62  ;;  %v385_v22 = vmul.f32 %v384_v18, %v348_v1  ;;  %v408_v23 = vmul.f32 %v401_v8, %v401_v8 }
 0x13d   : > { %v375_v17 = vadd.f32 %v374_v12, %v369_v11 }
 0x13e   : > { %406 = vst.msk [vmem:[%s959_s3] sm:$0x1] %vm405_vm2, %v404_v13  ;;  %v411_v27 = vmul.f32 0.0, %v408_v23 }
 0x13f   : > { %v381_v19 = vadd.f32 %v379_v16, %v375_v17 }
 0x141   : > { %v382_v21 = vmul.f32 2.0, %v381_v19 }
 0x143   : > { %v383_v24 = vadd.f32 %v382_v21, %v363_v20 }
 0x145   : > { %v386_v26 = vsub.f32 %v383_v24, %v385_v22 }
 0x147   : > { %v407_v28 = vadd.f32 %v400_v25, %v386_v26 }
 0x149   : > { %v412_v29 = vadd.f32 %v411_v27, %v407_v28 }
 0x14b   : > { %413 = vst.msk [vmem:[%s959_s3 + $0x1] sm:$0x1] %vm405_vm2, %v412_v29 }
 0x14c   : > { %701 = shalt.err (!%p698_p5)
}
 0x14d   : > { %s702_s18 = scalar_lea.hbm %s989_s5, 32  ;;  %s706_s26 = scalar_lea.hbm %s1042_s2, 64 }
 0x14e   : > { %p703_p10 = scmp.ne.s32.totalorder %s989_s5, %s702_s18  ;;  %p707_p7 = scmp.lt.u32.totalorder %s989_s5, %s1042_s2 }
 0x14f   : > { %p708_p3 = scmp.lt.u32.totalorder %s706_s26, %s702_s18  ;;  %p710_p11 = scmp.lt.u32.totalorder %s702_s18, %s989_s5 }
 0x150   : > { %p704_p1 = pnand %p703_p10, %p896_p13 }
 0x151   : > { %p709_p4 = por %p708_p3, %p707_p7 }
 0x152   : > { %p705_p2 = pneg %p704_p1 }
 0x153   : > { %p711_p6 = por %p710_p11, %p709_p4 }
 0x155   : > { %p712_p8 = pnand %p711_p6, %p705_p2 }
 0x157   : > { %715 = shalt.err (!%p712_p8)
}
 0x158   : > { %562 = dma.vmem_to_hbm [thread:$0]  (%p896_p13), %s991_s29, 32, %s989_s5, %s415_s7  }
 0x159 PF: > { %s440_s16 = sand.u32 1, %s754_s9   ;;  %p1061_p9 = scmp.ne.s32.totalorder %s1050_s20, 0 }
 0x15a   : > { %p1062_p12 = scmp.ge.s32.totalorder %s774_s14, 2  ;;  %s441_s23 = scalar_lea.sflag [#allocation4], %s440_s16 }
 0x15c   : > { %p573_p0 = pnand %p1062_p12, %p1061_p9 }
 0x15e   : > { %749 = dma.done.wait (!%p573_p0), %s441_s23, 32  }
 0x15f   : > { %751 = vsyncadd (!%p573_p0), %s441_s23, 4294967264  ;;  %s19_s14 = sadd.s32 1, %s774_s14   ;;  %s1063_s9 = smov %s758_s10 }
 0x160   : > { %p16_p5 = scmp.ge.s32.totalorder %s19_s14, 4   ;;  %s1064_s10 = smov %s762_s11 }
 0x161   : > { %s1065_s11 = smov %s904_s28  ;;  %s1066_s12 = smov %s770_s13 }
 0x162   : > { %s1067_s13 = smov %s1069_s25  ;;  %18 = sbr.rel (!%p16_p5) target bundleno = 7 (0x7), region = 82 }
 0x169   :  { %446 = vsyncpa [#allocation3], 1 }
 0x16a   :  { %448 = vsyncpa [#allocation3 + $0x1], 1 }
 0x16b   :  { %449 = vsyncpa [#allocation6], 1 }
 0x16c   :  { %451 = vsyncpa [#allocation6 + $0x1], 1 }
 0x16d   :  { %452 = vsyncpa [#allocation4], 1 }
 0x16e   :  { %454 = vsyncpa [#allocation4 + $0x1], 1 }

</bundles_post_ra>
